<compile_context>
chip_gen: v6e
topology: v6e:2x2x1
jax: 0.10.0
libtpu: 0.0.40
codegen_flags: <defaults>
</compile_context>

<pallas_src>
import jax
import jax.numpy as jnp
from jax.experimental import pallas as pl
from jax.experimental.pallas import tpu as pltpu


def _round_up(x: int, m: int) -> int:
    return ((x + m - 1) // m) * m


def value_embed_gather_kernel(ids_ref, tbl_hbm, out_ref, rows_vmem, sem):
    # ids_ref:   SMEM (N_pad,) int32      scalar-prefetched token ids
    # tbl_hbm:   HBM  (V, LH_pad)         layer-folded table (no auto-DMA)
    # out_ref:   VMEM (TN, LH_pad)        output block for this sequence tile
    # rows_vmem: VMEM (TN, LH_pad)        gather landing buffer
    # sem:       DMA semaphore
    ni = pl.program_id(0)
    tile_n = out_ref.shape[0]
    base = ni * tile_n

    # Issue all row DMAs for this tile; they overlap each other in flight.
    @pl.loop(0, tile_n)
    def _(r):
        row = ids_ref[base + r]
        pltpu.make_async_copy(tbl_hbm.at[row], rows_vmem.at[r], sem).start()

    # Drain: every copy has the same shape, so a same-shaped descriptor on the
    # same semaphore is a valid wait (paged-attention pattern).
    @pl.loop(0, tile_n)
    def _(r):
        pltpu.make_async_copy(tbl_hbm.at[0], rows_vmem.at[0], sem).wait()

    # Lane-dense (multiple-of-128 last dim) unmasked vector stores.
    out_ref[...] = rows_vmem[...]


def value_embedding_forward(inputs, tables, *, tile_n=256):
    """inputs: (B, T) int token ids; tables: (L, V, H) stacked embedding weights.

    Returns a list of 2*L arrays, each (B, T, H), matching the PyTorch module:
        ve = [emb(inputs) for emb in self.embed]; ve += reversed(ve)
    """
    b, t = inputs.shape
    l, v, h = tables.shape
    n = b * t
    lh = l * h
    itemsize = jnp.dtype(tables.dtype).itemsize

    # ---- wrapper-side layout plumbing (not in the hot loop) ----
    # Fold layers: (L, V, H) -> (V, L*H); column index = layer * H + hidden.
    tables_f = jnp.transpose(tables, (1, 0, 2)).reshape(v, lh)
    lh_pad = _round_up(lh, 128)                       # lane-dense output rows
    tbl = jnp.zeros((v, lh_pad), tables.dtype).at[:, :lh].set(tables_f)

    # Tile sizing: out double-buffer + gather scratch must fit every
    # generation's VMEM (v7x has 64 MiB per TensorCore -> budget ~40 MiB).
    budget = 40 << 20
    row_bytes = lh_pad * itemsize
    max_tile_n = max(8, (budget // (3 * row_bytes)) // 8 * 8)
    tile_n = int(min(tile_n, max_tile_n, _round_up(n, 8)))
    tile_n = _round_up(tile_n, 8)
    # Give the second TensorCore (v7x) work when everything fits one tile.
    if _round_up(n, tile_n) // tile_n < 2 and tile_n >= 16:
        tile_n = _round_up(tile_n // 2, 8)
    n_pad = _round_up(n, tile_n)

    # Token ids -> SMEM scalar-prefetch array.  Clamp (nn.Embedding would
    # raise on OOB ids); pad rows use id 0, their outputs are sliced off.
    # TODO(synk): no clean Pallas equivalent of nn.Embedding's OOB IndexError.
    ids = jnp.clip(inputs.reshape(n).astype(jnp.int32), 0, v - 1)
    ids_pad = jnp.zeros((n_pad,), jnp.int32).at[:n].set(ids)

    # Explicit VMEM budget from the actual footprint (never below the need).
    need = 2 * tile_n * lh_pad * itemsize + tile_n * lh_pad * itemsize
    vmem_limit = int(min(max(need + (4 << 20), 8 << 20), 100 << 20))

    out = pl.pallas_call(
        value_embed_gather_kernel,
        out_shape=jax.ShapeDtypeStruct((n_pad, lh_pad), tables.dtype),
        grid_spec=pltpu.PrefetchScalarGridSpec(
            num_scalar_prefetch=1,
            grid=(n_pad // tile_n,),
            in_specs=[pl.BlockSpec(memory_space=pl.ANY)],   # table stays in HBM
            out_specs=pl.BlockSpec((tile_n, lh_pad), lambda ni, ids: (ni, 0)),
            scratch_shapes=[
                pltpu.VMEM((tile_n, lh_pad), tables.dtype),
                pltpu.SemaphoreType.DMA(()),
            ],
        ),
        compiler_params=pltpu.CompilerParams(
            dimension_semantics=("parallel",),
            vmem_limit_bytes=vmem_limit,
        ),
    )(ids_pad, tbl)

    # Columns are already layer-major: slice each layer directly (no moveaxis,
    # no extra HBM transpose pass).
    ve = [out[:n, i * h:(i + 1) * h].reshape(b, t, h) for i in range(l)]
    ve = ve + ve[::-1]                                # ve += reversed(ve) (aliases)
    return ve


if __name__ == "__main__":
    # Small shapes consistent with the module's forward pass.
    vocab_size = 64
    hidden_size = 32
    num_encoder_layers = 3
    batch, seq = 2, 8

    key = jax.random.PRNGKey(0)
    k_ids, k_w = jax.random.split(key)

    # Deterministic synthetic parameters: stacked embedding tables (L, V, H).
    tables = (
        jax.random.normal(
            k_w, (num_encoder_layers, vocab_size, hidden_size), dtype=jnp.float32
        )
        * 0.02
    )
    inputs = jax.random.randint(
        k_ids, (batch, seq), minval=0, maxval=vocab_size, dtype=jnp.int32
    )

    ve = value_embedding_forward(inputs, tables)
    ve = [jax.block_until_ready(x) for x in ve]

    # Sanity check against a plain-JAX reference of the PyTorch semantics.
    ref = [tables[i][inputs] for i in range(num_encoder_layers)]
    ref = ref + ref[::-1]
    assert len(ve) == 2 * num_encoder_layers
    for got, want in zip(ve, ref):
        assert got.shape == (batch, seq, hidden_size)
        assert jnp.allclose(got, want), "mismatch vs reference"

    print("KERNEL_OK")
</pallas_src>

<mosaic_0001>
module attributes {stable_mosaic.version = 11 : i64} {
  func.func @value_embed_gather_kernel(%arg0: i32, %arg1: memref<16xi32, #tpu.memory_space<smem>>, %arg2: memref<64x128xf32, #tpu.memory_space<any>>, %arg3: memref<8x128xf32, #tpu.memory_space<vmem>>, %arg4: memref<8x128xf32, #tpu.memory_space<vmem>>, %arg5: memref<!tpu.dma_semaphore, #tpu.memory_space<semaphore_mem>>) attributes {dimension_semantics = [#tpu.dimension_semantics<parallel>], iteration_bounds = array<i64: 2>, scalar_prefetch = 1 : i64, scratch_operands = 2 : i64, tpu.core_type = #tpu.core_type<tc>, window_params = [{}, {transform_indices = @transform_1, window_bounds = array<i64: 8, 128>}]} {
    %c8_i32 = arith.constant 8 : i32
    %0 = arith.muli %arg0, %c8_i32 : i32
    %c0_i32 = arith.constant 0 : i32
    %c8_i32_0 = arith.constant 8 : i32
    %1 = arith.addi %c0_i32, %c8_i32_0 : i32
    %c1_i32 = arith.constant 1 : i32
    scf.for %arg6 = %c0_i32 to %1 step %c1_i32  : i32 {
      %c1_i32_8 = arith.constant 1 : i32
      %5 = arith.muli %arg6, %c1_i32_8 : i32
      %c0_i32_9 = arith.constant 0 : i32
      %6 = arith.addi %c0_i32_9, %5 : i32
      %7 = arith.addi %0, %6 : i32
      %8 = arith.index_cast %7 : i32 to index
      %9 = memref.load %arg1[%8] : memref<16xi32, #tpu.memory_space<smem>>
      %c0_i32_10 = arith.constant 0 : i32
      %10 = tpu.memref_slice %arg2[%9, %c0_i32_10] : memref<64x128xf32, #tpu.memory_space<any>> -> memref<1x128xf32, #tpu.memory_space<any>>
      %11 = tpu.memref_squeeze %10 : memref<1x128xf32, #tpu.memory_space<any>> -> memref<128xf32, #tpu.memory_space<any>>
      %c0_i32_11 = arith.constant 0 : i32
      %12 = tpu.memref_slice %arg4[%6, %c0_i32_11] : memref<8x128xf32, #tpu.memory_space<vmem>> -> memref<1x128xf32, #tpu.memory_space<vmem>>
      %13 = tpu.memref_squeeze %12 : memref<1x128xf32, #tpu.memory_space<vmem>> -> memref<128xf32, #tpu.memory_space<vmem>>
      tpu.enqueue_dma source(%11 : memref<128xf32, #tpu.memory_space<any>>) target(%13 : memref<128xf32, #tpu.memory_space<vmem>>) target_semaphore(%arg5 : memref<!tpu.dma_semaphore, #tpu.memory_space<semaphore_mem>>)
    }
    %c8_i32_1 = arith.constant 8 : i32
    %c0_i32_2 = arith.constant 0 : i32
    %c8_i32_3 = arith.constant 8 : i32
    %2 = arith.addi %c0_i32_2, %c8_i32_3 : i32
    %c1_i32_4 = arith.constant 1 : i32
    scf.for %arg6 = %c0_i32_2 to %2 step %c1_i32_4  : i32 {
      %c0_i32_8 = arith.constant 0 : i32
      %c0_i32_9 = arith.constant 0 : i32
      %c0_i32_10 = arith.constant 0 : i32
      %5 = tpu.memref_slice %arg2[%c0_i32_8, %c0_i32_10] : memref<64x128xf32, #tpu.memory_space<any>> -> memref<1x128xf32, #tpu.memory_space<any>>
      %6 = tpu.memref_squeeze %5 : memref<1x128xf32, #tpu.memory_space<any>> -> memref<128xf32, #tpu.memory_space<any>>
      %c0_i32_11 = arith.constant 0 : i32
      %7 = tpu.memref_slice %arg4[%c0_i32_9, %c0_i32_11] : memref<8x128xf32, #tpu.memory_space<vmem>> -> memref<1x128xf32, #tpu.memory_space<vmem>>
      %8 = tpu.memref_squeeze %7 : memref<1x128xf32, #tpu.memory_space<vmem>> -> memref<128xf32, #tpu.memory_space<vmem>>
      tpu.wait_dma2 semaphore(%arg5 : memref<!tpu.dma_semaphore, #tpu.memory_space<semaphore_mem>>) src(%6 : memref<128xf32, #tpu.memory_space<any>>) dst(%8 : memref<128xf32, #tpu.memory_space<vmem>>)
    }
    %c0 = arith.constant 0 : index
    %c0_5 = arith.constant 0 : index
    %3 = vector.load %arg4[%c0, %c0_5] : memref<8x128xf32, #tpu.memory_space<vmem>>, vector<8x128xf32>
    %c0_6 = arith.constant 0 : index
    %c0_7 = arith.constant 0 : index
    %4 = vector.load %arg3[%c0_6, %c0_7] : memref<8x128xf32, #tpu.memory_space<vmem>>, vector<8x128xf32>
    tpu.vector_store %arg3[%c0_6, %c0_7], %3 {strides = array<i32>} : memref<8x128xf32, #tpu.memory_space<vmem>>, vector<8x128xf32>,
    return
  }
  func.func @transform_1(%arg0: i32, %arg1: memref<16xi32, #tpu.memory_space<smem>>) -> (i32, i32) {
    %c0_i32 = arith.constant 0 : i32
    %c0_i32_0 = arith.constant 0 : i32
    return %arg0, %c0_i32 : i32, i32
  }
}

</mosaic_0001>

<bundles_post_ra>
// kernel: tpu_custom_call.1
= control target key start
LH: loop header
LB: loop body
LE: loop exit
PB: predicated region body
PF: predicated region fallthrough
CT: control target
= control target key end

     0   :  { %s324_s9 = smov [#allocation5]   ;;  %s446_s0 = inlined_call_operand.hbm [shape: s32[16], index: 0, kind: input, shape index: {}]   ;;  %s447_s1 = inlined_call_operand.hbm [shape: f32[64,128], index: 1, kind: input, shape index: {}]   ;;  %s448_s2 = inlined_call_operand.hbm [shape: f32[16,128], index: 2, kind: output, shape index: {}]  }
   0x1   :  { %8 = dma.hbm_to_smem %s446_s0, 16, %s324_s9, [#allocation4] }
   0x2   :  { %296 = dma.done.wait [#allocation4], 16 }
   0x3   :  { %297 = vsyncadd [#allocation4], 4294967280 }
   0x4   :  { %10 = sfence }
   0x5   :  { %11 = vsyncpa [#allocation7], 0 }
   0x6   :  { %13 = vsyncpa [#allocation7 + $0x1], 0  ;;  %s345_s12 = smov 0   ;;  %s347_s13 = smov 0  }
   0x7   :  { %s349_s14 = smov 0  }
   0x8 LB: > { %s161_s0 = sadd.s32 4294967295, %s314_s14   ;;  %s362_s15 = sadd.s32 1, %s314_s14   ;;  %s314_s14 = sphi %s349_s14, %s453_s14   ;;  %s310_s13 = sphi %s347_s13, %s452_s13   ;;  %s306_s12 = sphi %s345_s12, %s451_s12  }
   0x9   : > { %s22_s16 = ssub.s32 %s314_s14, %s362_s15  ;;  %s25_s17 = sadd.s32 1, %s310_s13 }
   0xa   : > { %p23_p0 = scmp.eq.s32.totalorder %s22_s16, 0  ;;  %p162_p1 = scmp.ne.s32.totalorder %s22_s16, 0 }
   0xb   : > { %p29_p2 = scmp.eq.s32.totalorder %s314_s14, 1  ;;  %p34_p3 = scmp.ne.s32.totalorder %s310_s13, %s306_s12 }
   0xc   : > { %s371_s18 = scalar_select %p23_p0, %s310_s13, %s25_s17  }
   0xd   : > { %p373_p4 = por %p162_p1, %p29_p2  ;;  %p35_p5 = scmp.eq.s32.totalorder %s161_s0, 1 }
   0xe   : > { %p163_p7 = scmp.ge.s32.totalorder %s314_s14, 2 }
   0xf   : > { %p377_p6 = por %p35_p5, %p34_p3  ;;  %s49_s21 = sand.u32 (!%p163_p7), 1, %s310_s13  }
  0x10   : > { %44 = sbr.rel (%p163_p7) target bundleno = 84 (0x54), region = 12  ;;  %s165_s22 = sshll.u32 (!%p163_p7), %s314_s14, 3 }
  0x11   : > { %s386_s23 = sshll.u32 (!%p163_p7), %s49_s21, 3  ;;  %s389_s25 = smov (!%p163_p7), 0  }
  0x12   : > { %s51_s24 = scalar_lea.vmem (!%p163_p7), [#allocation6], %s386_s23 }
  0x15 LB: >> { %s59_s26 = sadd.s32 %s318_s25, %s165_s22  ;;  %s63_s28 = scalar_lea.vmem [#allocation2], %s318_s25  ;;  %s318_s25 = sphi %s389_s25, %s58_s25  }
  0x16   : >> { %s60_s27 = sld [smem:[#allocation5 + %s59_s26]]  ;;  %s71_s29 = sshll.u32 %s63_s28, 4  ;;  %s72_s29 = int_to_ptr.vmem [resolvable:$true] %s71_s29 }
  0x17   : >> { %s230_s9 = scalar_lea.hbm %s447_s1, 1024 }
  0x1c   : >> { %s166_s30 = sshll.u32 %s60_s27, 4 }
  0x1d   : >> { %s62_s5 = scalar_lea.hbm %s447_s1, %s166_s30 }
  0x1e   : >> { %s228_s6 = scalar_lea.hbm %s62_s5, 16  ;;  %p231_p9 = scmp.lt.s32.totalorder %s62_s5, %s447_s1 }
  0x1f   : >> { %p229_p8 = scmp.ne.s32.totalorder %s62_s5, %s228_s6  ;;  %p232_p10 = scmp.lt.s32.totalorder %s230_s9, %s228_s6 }
  0x21   : >> { %p233_p11 = por %p232_p10, %p231_p9 }
  0x23   : >> { %p234_p12 = pnand %p233_p11, %p229_p8 }
  0x25   : >> { %237 = shalt.err (!%p234_p12)  }
  0x26   : >> { %s238_s0 = scalar_lea.vmem %s72_s29, 16  ;;  %s325_s16 = smov [#allocation2]  }
  0x27   : >> { %p239_p13 = scmp.ne.s32.totalorder %s72_s29, %s238_s0  ;;  %s240_s17 = sshll.u32 %s325_s16, 4  ;;  %s241_s17 = int_to_ptr.vmem [resolvable:$false] %s240_s17 }
  0x28   : >> { %s242_s26 = scalar_lea.vmem %s241_s17, 128  ;;  %p243_p0 = scmp.lt.s32.totalorder %s72_s29, %s241_s17 }
  0x29   : >> { %p244_p1 = scmp.lt.s32.totalorder %s242_s26, %s238_s0 }
  0x2b   : >> { %p245_p2 = por %p244_p1, %p243_p0 }
  0x2d   : >> { %p246_p3 = pnand %p245_p2, %p239_p13 }
  0x2f   : >> { %249 = shalt.err (!%p246_p3)  }
  0x30   : >> { %74 = dma.hbm_to_vmem [thread:$0]  %s62_s5, 16, %s72_s29, [#allocation3] }
  0x31   : >> { %s58_s25 = sadd.s32 1, %s318_s25  }
  0x32   : >> { %p55_p5 = scmp.ge.s32.totalorder %s58_s25, 8  }
  0x33   : > { %s320_s27 = smov (%p55_p5), 0  }
  0x34   : > { %57 = sbr.rel (!%p55_p5) target bundleno = 21 (0x15), region = 64 }
  0x39 LB: >> { %298 = dma.done.wait [#allocation3], 16  ;;  %s322_s27 = sphi %s320_s27, %s80_s27  }
  0x3a   : >> { %299 = vsyncadd [#allocation3], 4294967280  ;;  %s80_s27 = sadd.s32 1, %s322_s27  }
  0x3b   : >> { %p77_p7 = scmp.ge.s32.totalorder %s80_s27, 8  }
  0x3c   : > { %v83_v0 = vld [vmem:[#allocation2] sm:$0xff] (%p77_p7)  ;;  %s168_s28 = sshll.u32 (%p77_p7), %s314_s14, 7  ;;  %s99_s30 = sshll.u32 (%p77_p7), %s51_s24, 4  ;;  %s100_s30 = int_to_ptr.vmem [resolvable:$true] %s99_s30 }
  0x3d   : > { %79 = sbr.rel (!%p77_p7) target bundleno = 57 (0x39), region = 75  ;;  %84 = vst [vmem:[%s51_s24] sm:$0xff] (%p77_p7), %v83_v0  ;;  %s97_s29 = scalar_lea.hbm (%p77_p7), %s448_s2, %s168_s28 }
  0x3e   : > { %s86_s3 = scalar_lea.sflag (%p77_p7), [#allocation7], %s49_s21  ;;  %s250_s4 = scalar_lea.vmem (%p77_p7), %s100_s30, 128 }
  0x3f   : > { %p251_p8 = scmp.ne.s32.totalorder (%p77_p7), %s100_s30, %s250_s4  ;;  %s326_s5 = smov (%p77_p7), [#allocation6]  }
  0x40   : > { %s254_s6 = sshll.u32 (%p77_p7), %s326_s5, 4  ;;  %s255_s6 = int_to_ptr.vmem [resolvable:$false] %s254_s6 }
  0x41   : > { %p252_p9 = pnand (%p77_p7), %p251_p8, %p373_p4  ;;  %s256_s7 = scalar_lea.vmem (%p77_p7), %s255_s6, 256 }
  0x42   : > { %p257_p11 = scmp.lt.s32.totalorder %s100_s30, %s255_s6  ;;  %p258_p12 = scmp.lt.s32.totalorder %s256_s7, %s250_s4 }
  0x43   : > { %p253_p10 = pneg %p252_p9 }
  0x44   : > { %p259_p13 = por %p258_p12, %p257_p11 }
  0x46   : > { %p260_p0 = pnand %p259_p13, %p253_p10 }
  0x48   : > { %263 = shalt.err (!%p260_p0)
}
  0x49   : > { %s264_s8 = scalar_lea.hbm %s97_s29, 128  ;;  %s268_s24 = scalar_lea.hbm %s448_s2, 256 }
  0x4a   : > { %p265_p1 = scmp.ne.s32.totalorder %s97_s29, %s264_s8  ;;  %p269_p5 = scmp.lt.s32.totalorder %s97_s29, %s448_s2 }
  0x4b   : > { %p270_p7 = scmp.lt.s32.totalorder %s268_s24, %s264_s8 }
  0x4c   : > { %p266_p2 = pnand %p265_p1, %p373_p4 }
  0x4d   : > { %p271_p8 = por %p270_p7, %p269_p5 }
  0x4e   : > { %p267_p3 = pneg %p266_p2 }
  0x50   : > { %p272_p9 = pnand %p271_p8, %p267_p3 }
  0x52   : > { %275 = shalt.err (!%p272_p9)
}
  0x53   : > { %172 = dma.vmem_to_hbm [thread:$0]  (%p373_p4), %s100_s30, 128, %s97_s29, %s86_s3  }
  0x54 PF: > { %p178_p10 = scmp.ge.s32.totalorder %s314_s14, 1  ;;  %s111_s11 = sand.u32 1, %s306_s12  }
  0x55   : > { %s112_s0 = scalar_lea.sflag [#allocation7], %s111_s11 }
  0x56   : > { %p175_p11 = pnand %p178_p10, %p377_p6 }
  0x58   : > { %p176_p12 = pneg %p175_p11 }
  0x5a   : > { %301 = dma.done.wait (%p176_p12), %s112_s0, 128  }
  0x5b   : > { %303 = vsyncadd (%p176_p12), %s112_s0, 4294967168  ;;  %p16_p13 = scmp.ge.s32.totalorder %s362_s15, 3   ;;  %s451_s12 = smov %s310_s13 }
  0x5c   : > { %s452_s13 = smov %s371_s18  ;;  %s453_s14 = smov %s362_s15 }
  0x5d   :  { %18 = sbr.rel (!%p16_p13) target bundleno = 8 (0x8), region = 86 }
  0x62   :  { %117 = vsyncpa [#allocation7], 1 }
  0x63   :  { %119 = vsyncpa [#allocation7 + $0x1], 1 }
  0x64   :  { %120 = vsyncmov [#allocation3] }
  0x67   :  { %s121_s14 = vpop.sfrf %120 }
  0x68   :  { %p171_p4 = scmp.ne.s32.totalorder %s121_s14, 0 }
  0x6a   :  { %125 = shalt.err (%p171_p4)  }

</bundles_post_ra>
